<compile_context>
chip_gen: v5e
topology: v5e:2x2
jax: 0.10.0
libtpu: 0.0.40
codegen_flags: <defaults>
</compile_context>

<pallas_src>
import functools

import jax
import jax.numpy as jnp
from jax.experimental import pallas as pl
from jax.experimental.pallas import tpu as pltpu

BN_EPS = 1e-5
SLAB_LANES = 128


def _round_up(n, m):
    return -(-n // m) * m


def _make_fused_mlp_kernel(meta):
    """Fused eval-mode MLP over one packed parameter slab.

    meta: tuple of (w_row, c_in, c_out, p_row) per layer (static Python ints).
      slab[w_row : w_row + c_in, :c_out]  = folded W_l^T
      slab[p_row,              :c_out]    = folded bias b'_l
      slab[p_row+1 : p_row+3,  :c_out]    = (bn_scale, bn_shift) — last layer only
    Inner layers: h = relu(h @ W' + b')            (their BN folded forward)
    Last layer:   h = relu(h @ W' + b') * scale + shift
    """
    num_layers = len(meta)

    def kernel(x_ref, slab_ref, o_ref):
        h = x_ref[...]                                          # (N, C_0) f32
        for l, (w_row, c_in, c_out, p_row) in enumerate(meta):
            w = slab_ref[w_row:w_row + c_in, 0:c_out]           # (C_in, C_out)
            h = jnp.dot(h, w, preferred_element_type=jnp.float32)
            b = slab_ref[p_row:p_row + 1, 0:c_out]              # (1, C_out)
            h = jnp.maximum(h + b, 0.0)                         # bias + ReLU
            if l == num_layers - 1:                             # only final BN left
                scale = slab_ref[p_row + 1:p_row + 2, 0:c_out]
                shift = slab_ref[p_row + 2:p_row + 3, 0:c_out]
                h = h * scale + shift
        o_ref[...] = h.astype(o_ref.dtype)

    return kernel


@functools.partial(jax.jit, static_argnames=("meta",))
def mlp_forward(x, slab, meta):
    """Single gridless pallas_call for the whole MLP (eval mode)."""
    n = x.shape[0]
    c_out = meta[-1][2]
    vmem = pl.BlockSpec(memory_space=pltpu.MemorySpace.VMEM)
    return pl.pallas_call(
        _make_fused_mlp_kernel(meta),
        out_shape=jax.ShapeDtypeStruct((n, c_out), jnp.float32),
        in_specs=[vmem, vmem],
        out_specs=vmem,
    )(x, slab)


def init_mlp_params(key, channel_list):
    """Deterministic synthetic params matching nn.Linear / BatchNorm1d (eval)."""
    params = []
    for idx in range(1, len(channel_list)):
        c_in, c_out = channel_list[idx - 1], channel_list[idx]
        key, kw, kb, kg, kbe, km, kv = jax.random.split(key, 7)
        # nn.Linear weight is (c_out, c_in); store transposed (c_in, c_out).
        w_t = (jax.random.normal(kw, (c_in, c_out), jnp.float32)
               * (1.0 / jnp.sqrt(c_in)))
        b = jax.random.normal(kb, (1, c_out), jnp.float32) * 0.1
        gamma = 1.0 + 0.1 * jax.random.normal(kg, (1, c_out), jnp.float32)
        beta = 0.1 * jax.random.normal(kbe, (1, c_out), jnp.float32)
        mean = 0.1 * jax.random.normal(km, (1, c_out), jnp.float32)
        var = jnp.abs(1.0 + 0.1 * jax.random.normal(kv, (1, c_out), jnp.float32))
        params.append((w_t, b, gamma, beta, mean, var))
    return params


def pack_params(params):
    """Fold eval-mode BN and pack every parameter into one (rows, 128) slab.

    Inner-layer BN (scale, shift) is folded into the NEXT layer's weights and
    bias; the final layer keeps an explicit (scale, shift) pair, stored as two
    extra rows in its bias segment.
    """
    num_layers = len(params)
    scales, shifts = [], []
    for (_, _, gamma, beta, mean, var) in params:
        s = gamma * jax.lax.rsqrt(var + BN_EPS)                 # (1, C_out)
        scales.append(s)
        shifts.append(beta - mean * s)

    segments, meta, row = [], [], 0

    def pad_seg(a, n_rows):
        r, c = a.shape
        return jnp.pad(a, ((0, n_rows - r), (0, SLAB_LANES - c)))

    for l, (w_t, b, *_bn) in enumerate(params):
        if l == 0:
            w_f, b_f = w_t, b
        else:
            # Fold previous layer's BN into this Linear (exact up to FP assoc).
            w_f = scales[l - 1].reshape(-1, 1) * w_t            # diag(scale) @ W^T
            b_f = b + shifts[l - 1] @ w_t
        c_in, c_out = w_f.shape

        w_rows = _round_up(c_in, 8)
        segments.append(pad_seg(w_f, w_rows))
        w_row, row = row, row + w_rows

        if l < num_layers - 1:
            p = b_f                                             # (1, C_out)
        else:
            p = jnp.concatenate([b_f, scales[l], shifts[l]], 0)  # (3, C_out)
        segments.append(pad_seg(p, 8))
        p_row, row = row, row + 8

        meta.append((w_row, c_in, c_out, p_row))

    slab = jnp.concatenate(segments, axis=0)                    # (rows, 128)
    return slab, tuple(meta)


def mlp_reference(x, params):
    """Pure-JAX unfused reference: Linear -> ReLU -> BN(eval) -> Dropout(id)."""
    h = x
    for (w_t, b, gamma, beta, mean, var) in params:
        h = jnp.maximum(h @ w_t + b, 0.0)
        h = (h - mean) * jax.lax.rsqrt(var + BN_EPS) * gamma + beta
    return h


if __name__ == "__main__":
    key = jax.random.PRNGKey(0)
    key, kx = jax.random.split(key)

    channel_list = [4, 32, 16]          # MLP([4, 32, 16], 'ReLU', use_bn=True)
    batch = 8
    x = jax.random.normal(kx, (batch, channel_list[0]), jnp.float32)

    params = init_mlp_params(key, channel_list)
    slab, meta = pack_params(params)

    out = mlp_forward(x, slab, meta)
    out = jax.block_until_ready(out)

    assert out.shape == (batch, channel_list[-1])
    assert out.dtype == jnp.float32

    ref = mlp_reference(x, params)
    assert jnp.allclose(out, ref, rtol=1e-4, atol=1e-4), float(
        jnp.max(jnp.abs(out - ref)))

    print("KERNEL_OK")
</pallas_src>

<mosaic_0001>
module attributes {stable_mosaic.version = 11 : i64} {
  func.func @kernel(%arg0: memref<8x4xf32, #tpu.memory_space<vmem>>, %arg1: memref<56x128xf32, #tpu.memory_space<vmem>>, %arg2: memref<8x16xf32, #tpu.memory_space<vmem>>) attributes {dimension_semantics = [], scalar_prefetch = 0 : i64, scratch_operands = 0 : i64, tpu.core_type = #tpu.core_type<tc>} {
    %c0 = arith.constant 0 : index
    %c0_0 = arith.constant 0 : index
    %0 = vector.load %arg0[%c0, %c0_0] : memref<8x4xf32, #tpu.memory_space<vmem>>, vector<8x4xf32>
    %c0_1 = arith.constant 0 : index
    %c0_2 = arith.constant 0 : index
    %1 = vector.load %arg1[%c0_1, %c0_2] : memref<56x128xf32, #tpu.memory_space<vmem>>, vector<4x32xf32>
    %cst = arith.constant dense<0.000000e+00> : vector<8x32xf32>
    %2 = tpu.matmul %0, %1, %cst {dimension_numbers = #tpu.dot_dimension_numbers<[1], [0], [0], [1], [0, 0, 1, 1], [], []>} : vector<8x4xf32>, vector<4x32xf32>, vector<8x32xf32> -> vector<8x32xf32>
    %c8 = arith.constant 8 : index
    %c0_3 = arith.constant 0 : index
    %3 = vector.load %arg1[%c8, %c0_3] : memref<56x128xf32, #tpu.memory_space<vmem>>, vector<1x32xf32>
    %4 = vector.broadcast %3 : vector<1x32xf32> to vector<8x32xf32>
    %5 = arith.addf %2, %4 : vector<8x32xf32>
    %cst_4 = arith.constant 0.000000e+00 : f32
    %6 = vector.broadcast %cst_4 : f32 to vector<8x32xf32>
    %7 = arith.maximumf %5, %6 : vector<8x32xf32>
    %c16 = arith.constant 16 : index
    %c0_5 = arith.constant 0 : index
    %8 = vector.load %arg1[%c16, %c0_5] : memref<56x128xf32, #tpu.memory_space<vmem>>, vector<32x16xf32>
    %cst_6 = arith.constant dense<0.000000e+00> : vector<8x16xf32>
    %9 = tpu.matmul %7, %8, %cst_6 {dimension_numbers = #tpu.dot_dimension_numbers<[1], [0], [0], [1], [0, 0, 1, 1], [], []>} : vector<8x32xf32>, vector<32x16xf32>, vector<8x16xf32> -> vector<8x16xf32>
    %c48 = arith.constant 48 : index
    %c0_7 = arith.constant 0 : index
    %10 = vector.load %arg1[%c48, %c0_7] : memref<56x128xf32, #tpu.memory_space<vmem>>, vector<1x16xf32>
    %11 = vector.broadcast %10 : vector<1x16xf32> to vector<8x16xf32>
    %12 = arith.addf %9, %11 : vector<8x16xf32>
    %cst_8 = arith.constant 0.000000e+00 : f32
    %13 = vector.broadcast %cst_8 : f32 to vector<8x16xf32>
    %14 = arith.maximumf %12, %13 : vector<8x16xf32>
    %c49 = arith.constant 49 : index
    %c0_9 = arith.constant 0 : index
    %15 = vector.load %arg1[%c49, %c0_9] : memref<56x128xf32, #tpu.memory_space<vmem>>, vector<1x16xf32>
    %c50 = arith.constant 50 : index
    %c0_10 = arith.constant 0 : index
    %16 = vector.load %arg1[%c50, %c0_10] : memref<56x128xf32, #tpu.memory_space<vmem>>, vector<1x16xf32>
    %17 = vector.broadcast %15 : vector<1x16xf32> to vector<8x16xf32>
    %18 = arith.mulf %14, %17 : vector<8x16xf32>
    %19 = vector.broadcast %16 : vector<1x16xf32> to vector<8x16xf32>
    %20 = arith.addf %18, %19 : vector<8x16xf32>
    %c0_11 = arith.constant 0 : index
    %c0_12 = arith.constant 0 : index
    %21 = vector.load %arg2[%c0_11, %c0_12] : memref<8x16xf32, #tpu.memory_space<vmem>>, vector<8x16xf32>
    tpu.vector_store %arg2[%c0_11, %c0_12], %20 {strides = array<i32>} : memref<8x16xf32, #tpu.memory_space<vmem>>, vector<8x16xf32>,
    return
  }
}

</mosaic_0001>

<bundles_post_ra>
// kernel: mlp_forward.1
= control target key start
LH: loop header
LB: loop body
LE: loop exit
PB: predicated region body
PF: predicated region fallthrough
CT: control target
= control target key end

     0   :  { %7 = vsyncpa [#allocation3], 0  ;;  %s208_s0 = inlined_call_operand.vmem [shape: f32[8,4], index: 0, kind: input, shape index: {}]   ;;  %s209_s1 = inlined_call_operand.hbm [shape: f32[56,128], index: 1, kind: input, shape index: {}]   ;;  %s210_s2 = inlined_call_operand.hbm [shape: f32[8,16], index: 2, kind: output, shape index: {}]  }
   0x1   :  { %8 = vsyncpa [#allocation4], 0  ;;  %s15_s11 = sshll.u32 %s209_s1, 4  ;;  %s180_s12 = smov [#allocation2]   ;;  %s16_s11 = int_to_ptr.hbm [resolvable:$true] %s15_s11 }
   0x2   :  { %s17_s13 = sshll.u32 %s180_s12, 4  ;;  %s181_s14 = smov 128   ;;  %s18_s13 = int_to_ptr.vmem [resolvable:$true] %s17_s13 }
   0x3   :  { %s182_s15 = smov 8  }
   0x4   :  { %23 = dma.hbm_to_vmem [thread:$0]  %s16_s11, 896, %s18_s13, [#allocation3], %s181_s14, %s181_s14, %s182_s15  }
   0x5   :  { %176 = dma.done.wait [#allocation3], 896  }
   0x6   :  { %177 = vsyncadd [#allocation3], 4294966400  ;;  %vm36_vm0 = vcmask 1043456   ;;  %vm32_vm1 = vcmask 31744   ;;  %v29_v0 = vld [vmem:[#allocation2] sm:$0xf] }
   0x7   :  { %v28_v1 = vld [vmem:[%s208_s0] sm:$0xff]  ;;  %v64_v2 = vld [vmem:[#allocation2 + $0x28] sm:$0xff]  ;;  %117 = vmatpush.msk.msra.mxu0 %vm36_vm0, %v29_v0  ;;  %v62_v4 = vld [vmem:[#allocation2 + $0x18] sm:$0xff]  ;;  %vm67_vm2 = vcmask 261120   ;;  %s183_s0 = smov [#allocation5]   ;;  %s107_s20 = sshll.u32 %s210_s2, 4  ;;  %s108_s20 = int_to_ptr.hbm [resolvable:$true] %s107_s20 }
   0x8   :  { %83 = vmatpush.msra.mxu1 %v64_v2  ;;  %118 = vmatmul.msk.f32.vlgmr.msra.gmra.mxu0 %vm32_vm1, %v28_v1  ;;  %v63_v3 = vld [vmem:[#allocation2 + $0x20] sm:$0xff]  ;;  %v61_v5 = vld [vmem:[#allocation2 + $0x10] sm:$0xff]  ;;  %v124_v6 = vld [vmem:[#allocation2 + $0x8] ss:$0 sm:$0xff]  ;;  %s105_s1 = sshll.u32 %s183_s0, 4  ;;  %vm98_vm3 = vcmask 130048   ;;  %s106_s1 = int_to_ptr.vmem [resolvable:$true] %s105_s1 }
   0x9   :  { %v125_v10 = vld [vmem:[#allocation2 + $0x30] ss:$0 sm:$0xff]  ;;  %v126_v13 = vld [vmem:[#allocation2 + $0x31] ss:$0 sm:$0xff]  ;;  %v127_v15 = vld [vmem:[#allocation2 + $0x32] ss:$0 sm:$0xff] }
   0xa   :  { %84 = vmatpush.msra.mxu1 %v63_v3 }
   0xc   :  { %85 = vmatpush.msra.mxu1 %v62_v4 }
   0xe   :  { %86 = vmatpush.msra.mxu1 %v61_v5 }
  0x85   :  { %v57_v7 = vpop.f32.mrf.mxu0 }
  0x86   :  { %v58_v8 = vadd.f32 %v124_v6, %v57_v7 }
  0x88   :  { %v60_v9 = vmax.f32 %v58_v8, 0.0 }
  0x8a   :  { %119 = vmatmul.msk.f32.vlgmr.msra.gmra.mxu1 %vm67_vm2, %v60_v9 }
 0x107   :  { %v88_v11 = vpop.f32.mrf.mxu1 }
 0x108   :  { %v89_v12 = vadd.f32 %v125_v10, %v88_v11 }
 0x10a   :  { %v91_v14 = vmax.f32 %v89_v12, 0.0 }
 0x10c   :  { %v95_v16 = vmul.f32 %v126_v13, %v91_v14 }
 0x10e   :  { %v97_v17 = vadd.f32 %v127_v15, %v95_v16 }
 0x110   :  { %99 = vst.msk [vmem:[#allocation5] sm:$0xff] %vm98_vm3, %v97_v17 }
 0x111   :  { %110 = dma.vmem_to_hbm [thread:$0]  %s106_s1, 128, %s108_s20, [#allocation4]  }
 0x112   :  { %178 = dma.done.wait [#allocation4], 128  }
 0x113   :  { %179 = vsyncadd [#allocation4], 4294967168 }
 0x114   :  { %115 = vsyncpa [#allocation3], 1 }
 0x115   :  { %116 = vsyncpa [#allocation4], 1 }

</bundles_post_ra>
